<compile_context>
chip_gen: v7x
topology: tpu7x:2x2x1
jax: 0.10.0
libtpu: 0.0.40
codegen_flags: <defaults>
</compile_context>

<pallas_src>
import jax
import jax.numpy as jnp
from jax.experimental import pallas as pl
from jax.experimental.pallas import tpu as pltpu

# ----------------------------- configuration --------------------------------
B = 8              # batch (padded/stacked to fill the 8 f32 sublanes)
F = 8              # number_inputs
F_PAD = 16         # x padded to 16 lanes (bf16 sublane-aligned W_in block)
E = 32             # input_nn_hidden_sizes[-1]
H = 32             # lstm_hidden_size
NL = 2             # lstm_num_layers
O1 = 32            # output_nn_hidden_sizes[0]
R = 2              # number_rooms
TEMP_COLS = (0, 1)     # temperature_column (must equal 0..R-1, see make_params)
CASE_COL = 2           # case_column
DIV_FACTOR = (10.0, 10.0)
LN_EPS = 1e-5          # PyTorch nn.LayerNorm default eps

# ---- bf16 weight slab row offsets (all 16-aligned for bf16 sublane tiles) ---
W_IN_OFF = 0        # 16 rows: W_in  (F, E)        lane-padded to 128
W_IH0_OFF = 16      # 32 rows: W_ih0 (E, 4H=128)   gate-prescaled
W_HH0_OFF = 48      # 32 rows: W_hh0 (H, 4H)       gate-prescaled
W_IH1_OFF = 80      # 32 rows: W_ih1 (H, 4H)       gate-prescaled
W_HH1_OFF = 112     # 32 rows: W_hh1 (H, 4H)       gate-prescaled
W_O1_OFF = 144      # 32 rows: W_o1  (H, O1)       lane-padded to 128
W_O2_OFF = 176      # 32 rows: W_o2  (O1, R)       lane-padded to 128
W_ROWS = 208

# ---- f32 vector slab rows ---------------------------------------------------
ROW_B_IN = 0        # input_nn bias                      (lanes 0:E)
ROW_B0 = 1          # LSTM l0 combined bias (b_ih+b_hh), gate-prescaled
ROW_B1 = 2          # LSTM l1 combined bias,             gate-prescaled
ROW_LN_G = 3        # LayerNorm weight                   (lanes 0:H)
ROW_LN_B = 4        # LayerNorm bias
ROW_B_O1 = 5        # output_nn[0] bias                  (lanes 0:O1)
ROW_B_O2 = 6        # output_nn[1] bias                  (lanes 0:R)
ROW_INV_DIV = 7     # 1 / division_factor                (lanes 0:R)
ROW_LAST = 8        # initial self.last (== 0 on the states=None path)
ROW_H0 = 9          # initial h, layer 0                 (lanes 0:H)
ROW_H1 = 10         # initial h, layer 1
ROW_C0 = 11         # initial c, layer 0
ROW_C1 = 12         # initial c, layer 1
ROW_GATE_SCALE = 13 # 0.5 on i/f/o gate lanes, 1.0 on g lanes
ROW_GATE_OFF = 14   # 0.5 on i/f/o gate lanes, 0.0 on g lanes
ROW_TEMP_MASK = 15  # 1.0 at temperature-column lanes of x
V_ROWS = 16


# ------------------------------- kernel -------------------------------------
def lstm_forward_kernel(x_ref, w_ref, v_ref, out_ref, state_ref,
                        h_scr, c_scr, last_scr):
    f32, bf16 = jnp.float32, jnp.bfloat16
    t = pl.program_id(0)

    def vrow(i, n=128):                       # (1, n) f32 slab row
        return v_ref[i:i + 1, 0:n]

    # ---- t == 0: states=None path -> initial (h, c) and self.last ----------
    @pl.when(t == 0)
    def _init():
        h_scr[0] = jnp.broadcast_to(vrow(ROW_H0, H), (B, H))
        h_scr[1] = jnp.broadcast_to(vrow(ROW_H1, H), (B, H))
        c_scr[0] = jnp.broadcast_to(vrow(ROW_C0, H), (B, H))
        c_scr[1] = jnp.broadcast_to(vrow(ROW_C1, H), (B, H))
        last_scr[...] = jnp.broadcast_to(vrow(ROW_LAST), (B, 128))

    x = x_ref[0]                              # (B, F_PAD) f32, this step's input
    last = last_scr[...]                      # (B, 128) f32, lanes R.. are 0

    # x[:, temperature_column] = self.last  (temperature columns == 0..R-1,
    # so a constant lane-mask VPU select is exact -- no XLU, valid for any last)
    tmask = vrow(ROW_TEMP_MASK, F_PAD)        # (1, F_PAD)
    x_in = jnp.where(tmask > 0.5, last[:, :F_PAD], x)

    # ---- input_nn: Linear(F, E) + ReLU (lane-padded; lanes E..127 stay 0) ---
    emb_pad = jnp.maximum(
        jnp.dot(x_in.astype(bf16), w_ref[W_IN_OFF:W_IN_OFF + F_PAD, :],
                preferred_element_type=f32) + vrow(ROW_B_IN), 0.0)   # (B, 128)
    emb = emb_pad[:, :E]                      # (B, E) free lane-0 slice

    # ---- previous state -----------------------------------------------------
    h0, h1 = h_scr[0], h_scr[1]               # (B, H) each
    c0, c1 = c_scr[0], c_scr[1]

    # Recurrent contributions for BOTH layers up front: they depend only on the
    # previous state, so these matmuls overlap with the layer-0 elementwise work.
    hh0 = jnp.dot(h0.astype(bf16), w_ref[W_HH0_OFF:W_HH0_OFF + H, :],
                  preferred_element_type=f32)                        # (B, 4H)
    hh1 = jnp.dot(h1.astype(bf16), w_ref[W_HH1_OFF:W_HH1_OFF + H, :],
                  preferred_element_type=f32)

    gscale = vrow(ROW_GATE_SCALE)             # (1, 128)
    goff = vrow(ROW_GATE_OFF)

    def cell(xh_pre, hh_pre, b_row, c_prev):
        # W/b already carry the 0.5 prescale on the i/f/o gate columns, so a
        # single full-vreg tanh gives all four gates:
        #   sigmoid(z) = 0.5 + 0.5 * tanh(z / 2)   (i, f, o lanes)
        #   tanh(z)                                  (g lanes)
        pre = xh_pre + hh_pre + b_row                         # (B, 4H) f32
        act = jnp.tanh(pre) * gscale + goff                   # [si|sf|tg|so]
        i_g = act[:, 0 * H:1 * H]
        f_g = act[:, 1 * H:2 * H]
        g_g = act[:, 2 * H:3 * H]
        o_g = act[:, 3 * H:4 * H]
        c_new = f_g * c_prev + i_g * g_g
        h_new = o_g * jnp.tanh(c_new)
        return h_new, c_new

    # ---- LSTM layer 0 -------------------------------------------------------
    xh0 = jnp.dot(emb.astype(bf16), w_ref[W_IH0_OFF:W_IH0_OFF + E, :],
                  preferred_element_type=f32)
    h0n, c0n = cell(xh0, hh0, vrow(ROW_B0), c0)

    # ---- LSTM layer 1 -------------------------------------------------------
    xh1 = jnp.dot(h0n.astype(bf16), w_ref[W_IH1_OFF:W_IH1_OFF + H, :],
                  preferred_element_type=f32)
    h1n, c1n = cell(xh1, hh1, vrow(ROW_B1), c1)

    # carry the state to the next grid step
    h_scr[0] = h0n
    h_scr[1] = h1n
    c_scr[0] = c0n
    c_scr[1] = c1n

    # ---- LayerNorm over the hidden dim --------------------------------------
    y = h1n
    mean = jnp.mean(y, axis=-1, keepdims=True)
    var = jnp.mean((y - mean) ** 2, axis=-1, keepdims=True)
    y = ((y - mean) * jax.lax.rsqrt(var + LN_EPS) * vrow(ROW_LN_G, H)
         + vrow(ROW_LN_B, H))

    # ---- output_nn: (Linear -> Tanh) x 2 (padded lanes stay 0: padded weight
    #      columns / biases are zero and tanh(0) = 0) ------------------------
    t1 = jnp.tanh(jnp.dot(y.astype(bf16), w_ref[W_O1_OFF:W_O1_OFF + H, :],
                          preferred_element_type=f32) + vrow(ROW_B_O1))
    t2 = jnp.tanh(jnp.dot(t1[:, :O1].astype(bf16),
                          w_ref[W_O2_OFF:W_O2_OFF + O1, :],
                          preferred_element_type=f32) + vrow(ROW_B_O2))

    # output = temp / division_factor + x[:, -1, temperature_column]
    # (the temperature columns were just overwritten with `last`; inv_div is
    #  zero beyond lane R, so lanes R..127 stay 0)
    out_pre = t2 * vrow(ROW_INV_DIV) + last                   # (B, 128)

    # self.last = output.clone()   (BEFORE the case-column zeroing)
    last_scr[...] = out_pre

    # output[where(x[:, -1, case_column] < 1e-6)[0], :] = 0.0
    case = x[:, CASE_COL:CASE_COL + 1]                        # (B, 1)
    out_ref[0] = jnp.where(case < 1e-6, 0.0, out_pre)         # lane-dense store

    # final (h, c) of the chained calls, written once at the last step
    @pl.when(t == pl.num_programs(0) - 1)
    def _final():
        state_ref[0] = h0n
        state_ref[1] = h1n
        state_ref[2] = c0n
        state_ref[3] = c1n


# ------------------------------- wrapper -------------------------------------
@jax.jit
def lstm_forward(x_seq, wslab, vslab):
    """x_seq: (T, B, F) f32 -- T chained forward() calls (T=1 == single call).
    Returns (outputs (T, B, R), (h, c) each (NL, B, H) after the last step)."""
    if x_seq.ndim == 2:                       # single module call
        x_seq = x_seq[None]
    T = x_seq.shape[0]
    x_pad = jnp.zeros((T, B, F_PAD), jnp.float32).at[:, :, :F].set(x_seq)

    grid_spec = pltpu.PrefetchScalarGridSpec(
        num_scalar_prefetch=0,
        grid=(T,),
        in_specs=[
            pl.BlockSpec((1, B, F_PAD), lambda t: (t, 0, 0)),     # per-step x
            pl.BlockSpec((W_ROWS, 128), lambda t: (0, 0)),        # resident slab
            pl.BlockSpec((V_ROWS, 128), lambda t: (0, 0)),        # resident slab
        ],
        out_specs=[
            pl.BlockSpec((1, B, 128), lambda t: (t, 0, 0)),       # per-step out
            pl.BlockSpec((2 * NL, B, H), lambda t: (0, 0, 0)),    # final state
        ],
        scratch_shapes=[
            pltpu.VMEM((NL, B, H), jnp.float32),                  # h carry
            pltpu.VMEM((NL, B, H), jnp.float32),                  # c carry
            pltpu.VMEM((B, 128), jnp.float32),                    # self.last carry
        ],
    )

    out_seq, state = pl.pallas_call(
        lstm_forward_kernel,
        out_shape=(jax.ShapeDtypeStruct((T, B, 128), jnp.float32),
                   jax.ShapeDtypeStruct((2 * NL, B, H), jnp.float32)),
        grid_spec=grid_spec,
        compiler_params=pltpu.CompilerParams(
            dimension_semantics=("arbitrary",)),   # time is a recurrence
    )(x_pad, wslab, vslab)

    out = out_seq[:, :, :R]                   # (T, B, R)
    h, c = state[:NL], state[NL:]             # (NL, B, H) each
    return out, (h, c)


# --------------------------- parameter building ------------------------------
def _xavier(key, out_f, in_f):
    # nn.init.xavier_normal_ on a (out_f, in_f) weight, returned transposed to
    # the (in_features, out_features) layout used by the kernel.
    std = (2.0 / (in_f + out_f)) ** 0.5
    w = std * jax.random.normal(key, (out_f, in_f), dtype=jnp.float32)
    return w.T


def make_params(key):
    # The lane-mask substitution x[:, temp_cols] = last assumes the
    # temperature columns are exactly 0..R-1 (true in this configuration).
    assert tuple(TEMP_COLS) == tuple(range(R))
    ks = jax.random.split(key, 7)

    # gate prescale: 0.5 on i/f/o columns (sigmoid via tanh), 1.0 on g columns
    gate_scale = jnp.ones((4 * H,), jnp.float32)
    gate_scale = gate_scale.at[0:2 * H].set(0.5).at[3 * H:4 * H].set(0.5)
    gate_off = jnp.zeros((4 * H,), jnp.float32)
    gate_off = gate_off.at[0:2 * H].set(0.5).at[3 * H:4 * H].set(0.5)

    # ---- bf16 weight slab (W_ROWS, 128) ----
    wslab = jnp.zeros((W_ROWS, 128), jnp.float32)
    wslab = wslab.at[W_IN_OFF:W_IN_OFF + F, 0:E].set(_xavier(ks[0], E, F))
    wslab = wslab.at[W_IH0_OFF:W_IH0_OFF + E, :].set(
        _xavier(ks[1], 4 * H, E) * gate_scale)
    wslab = wslab.at[W_HH0_OFF:W_HH0_OFF + H, :].set(
        _xavier(ks[2], 4 * H, H) * gate_scale)
    wslab = wslab.at[W_IH1_OFF:W_IH1_OFF + H, :].set(
        _xavier(ks[3], 4 * H, H) * gate_scale)
    wslab = wslab.at[W_HH1_OFF:W_HH1_OFF + H, :].set(
        _xavier(ks[4], 4 * H, H) * gate_scale)
    wslab = wslab.at[W_O1_OFF:W_O1_OFF + H, 0:O1].set(_xavier(ks[5], O1, H))
    wslab = wslab.at[W_O2_OFF:W_O2_OFF + O1, 0:R].set(_xavier(ks[6], R, O1))
    wslab = wslab.astype(jnp.bfloat16)        # bf16 MXU operands

    # ---- f32 vector slab (V_ROWS, 128) ----
    vslab = jnp.zeros((V_ROWS, 128), jnp.float32)
    # All Linear / LSTM biases are zero (PyTorch init loop sets 'bias' to 0).
    # NOTE: when loading trained PyTorch weights, ROW_B0/ROW_B1 must hold
    # (bias_ih + bias_hh) * gate_scale.
    vslab = vslab.at[ROW_LN_G, 0:H].set(1.0)                     # LN weight
    vslab = vslab.at[ROW_INV_DIV, 0:R].set(
        1.0 / jnp.array(DIV_FACTOR, jnp.float32))
    vslab = vslab.at[ROW_GATE_SCALE, 0:4 * H].set(gate_scale)
    vslab = vslab.at[ROW_GATE_OFF, 0:4 * H].set(gate_off)
    vslab = vslab.at[ROW_TEMP_MASK, jnp.array(TEMP_COLS)].set(1.0)
    # ROW_LAST and ROW_H0/H1/C0/C1 stay zero: states=None path with the
    # learned initial hidden/cell states at their zero initialisation.
    return wslab, vslab


# ---------------------------------- main -------------------------------------
if __name__ == "__main__":
    key = jax.random.PRNGKey(0)
    k_x, k_p = jax.random.split(key)
    T = 8                                      # 8 chained module invocations
    x_seq = jax.random.normal(k_x, (T, B, F), dtype=jnp.float32)
    wslab, vslab = make_params(k_p)

    out, (h, c) = lstm_forward(x_seq, wslab, vslab)
    jax.block_until_ready((out, h, c))

    assert out.shape == (T, B, R)
    assert h.shape == (NL, B, H) and c.shape == (NL, B, H)
    assert bool(jnp.all(jnp.isfinite(out)))
    assert bool(jnp.all(jnp.isfinite(h))) and bool(jnp.all(jnp.isfinite(c)))
    print("KERNEL_OK")
</pallas_src>

<mosaic_0001>
module attributes {stable_mosaic.version = 11 : i64} {
  func.func @lstm_forward_kernel(%arg0: i32, %arg1: memref<1x8x16xf32, #tpu.memory_space<vmem>>, %arg2: memref<208x128xbf16, #tpu.memory_space<vmem>>, %arg3: memref<16x128xf32, #tpu.memory_space<vmem>>, %arg4: memref<1x8x128xf32, #tpu.memory_space<vmem>>, %arg5: memref<4x8x32xf32, #tpu.memory_space<vmem>>, %arg6: memref<2x8x32xf32, #tpu.memory_space<vmem>>, %arg7: memref<2x8x32xf32, #tpu.memory_space<vmem>>, %arg8: memref<8x128xf32, #tpu.memory_space<vmem>>) attributes {dimension_semantics = [#tpu.dimension_semantics<arbitrary>], iteration_bounds = array<i64: 8>, scalar_prefetch = 0 : i64, scratch_operands = 3 : i64, tpu.core_type = #tpu.core_type<tc>, window_params = [{transform_indices = @transform_0, window_bounds = array<i64: 1, 8, 16>}, {pipeline_mode = #tpu.pipeline_mode<synchronous>, transform_indices = @transform_1, window_bounds = array<i64: 208, 128>}, {pipeline_mode = #tpu.pipeline_mode<synchronous>, transform_indices = @transform_2, window_bounds = array<i64: 16, 128>}, {transform_indices = @transform_3, window_bounds = array<i64: 1, 8, 128>}, {pipeline_mode = #tpu.pipeline_mode<synchronous>, transform_indices = @transform_4, window_bounds = array<i64: 4, 8, 32>}]} {
    %c0_i32 = arith.constant 0 : i32
    %0 = arith.cmpi eq, %arg0, %c0_i32 : i32
    %1 = arith.extui %0 : i1 to i32
    %c0_i32_0 = arith.constant 0 : i32
    %2 = arith.cmpi ne, %1, %c0_i32_0 : i32
    scf.if %2 {
      %c9 = arith.constant 9 : index
      %c0_70 = arith.constant 0 : index
      %149 = vector.load %arg3[%c9, %c0_70] : memref<16x128xf32, #tpu.memory_space<vmem>>, vector<1x32xf32>
      %150 = vector.shape_cast %149 : vector<1x32xf32> to vector<1x32xf32>
      %151 = vector.broadcast %150 : vector<1x32xf32> to vector<8x32xf32>
      %c0_71 = arith.constant 0 : index
      %c0_72 = arith.constant 0 : index
      %c0_73 = arith.constant 0 : index
      %152 = vector.load %arg6[%c0_71, %c0_72, %c0_73] : memref<2x8x32xf32, #tpu.memory_space<vmem>>, vector<1x8x32xf32>
      %153 = vector.shape_cast %152 : vector<1x8x32xf32> to vector<8x32xf32>
      %154 = vector.shape_cast %151 : vector<8x32xf32> to vector<1x8x32xf32>
      tpu.vector_store %arg6[%c0_71, %c0_72, %c0_73], %154 {strides = array<i32>} : memref<2x8x32xf32, #tpu.memory_space<vmem>>, vector<1x8x32xf32>,
      %c10 = arith.constant 10 : index
      %c0_74 = arith.constant 0 : index
      %155 = vector.load %arg3[%c10, %c0_74] : memref<16x128xf32, #tpu.memory_space<vmem>>, vector<1x32xf32>
      %156 = vector.shape_cast %155 : vector<1x32xf32> to vector<1x32xf32>
      %157 = vector.broadcast %156 : vector<1x32xf32> to vector<8x32xf32>
      %c1_75 = arith.constant 1 : index
      %c0_76 = arith.constant 0 : index
      %c0_77 = arith.constant 0 : index
      %158 = vector.load %arg6[%c1_75, %c0_76, %c0_77] : memref<2x8x32xf32, #tpu.memory_space<vmem>>, vector<1x8x32xf32>
      %159 = vector.shape_cast %158 : vector<1x8x32xf32> to vector<8x32xf32>
      %160 = vector.shape_cast %157 : vector<8x32xf32> to vector<1x8x32xf32>
      tpu.vector_store %arg6[%c1_75, %c0_76, %c0_77], %160 {strides = array<i32>} : memref<2x8x32xf32, #tpu.memory_space<vmem>>, vector<1x8x32xf32>,
      %c11 = arith.constant 11 : index
      %c0_78 = arith.constant 0 : index
      %161 = vector.load %arg3[%c11, %c0_78] : memref<16x128xf32, #tpu.memory_space<vmem>>, vector<1x32xf32>
      %162 = vector.shape_cast %161 : vector<1x32xf32> to vector<1x32xf32>
      %163 = vector.broadcast %162 : vector<1x32xf32> to vector<8x32xf32>
      %c0_79 = arith.constant 0 : index
      %c0_80 = arith.constant 0 : index
      %c0_81 = arith.constant 0 : index
      %164 = vector.load %arg7[%c0_79, %c0_80, %c0_81] : memref<2x8x32xf32, #tpu.memory_space<vmem>>, vector<1x8x32xf32>
      %165 = vector.shape_cast %164 : vector<1x8x32xf32> to vector<8x32xf32>
      %166 = vector.shape_cast %163 : vector<8x32xf32> to vector<1x8x32xf32>
      tpu.vector_store %arg7[%c0_79, %c0_80, %c0_81], %166 {strides = array<i32>} : memref<2x8x32xf32, #tpu.memory_space<vmem>>, vector<1x8x32xf32>,
      %c12 = arith.constant 12 : index
      %c0_82 = arith.constant 0 : index
      %167 = vector.load %arg3[%c12, %c0_82] : memref<16x128xf32, #tpu.memory_space<vmem>>, vector<1x32xf32>
      %168 = vector.shape_cast %167 : vector<1x32xf32> to vector<1x32xf32>
      %169 = vector.broadcast %168 : vector<1x32xf32> to vector<8x32xf32>
      %c1_83 = arith.constant 1 : index
      %c0_84 = arith.constant 0 : index
      %c0_85 = arith.constant 0 : index
      %170 = vector.load %arg7[%c1_83, %c0_84, %c0_85] : memref<2x8x32xf32, #tpu.memory_space<vmem>>, vector<1x8x32xf32>
      %171 = vector.shape_cast %170 : vector<1x8x32xf32> to vector<8x32xf32>
      %172 = vector.shape_cast %169 : vector<8x32xf32> to vector<1x8x32xf32>
      tpu.vector_store %arg7[%c1_83, %c0_84, %c0_85], %172 {strides = array<i32>} : memref<2x8x32xf32, #tpu.memory_space<vmem>>, vector<1x8x32xf32>,
      %c8 = arith.constant 8 : index
      %c0_86 = arith.constant 0 : index
      %173 = vector.load %arg3[%c8, %c0_86] : memref<16x128xf32, #tpu.memory_space<vmem>>, vector<1x128xf32>
      %174 = vector.shape_cast %173 : vector<1x128xf32> to vector<1x128xf32>
      %175 = vector.broadcast %174 : vector<1x128xf32> to vector<8x128xf32>
      %c0_87 = arith.constant 0 : index
      %c0_88 = arith.constant 0 : index
      %176 = vector.load %arg8[%c0_87, %c0_88] : memref<8x128xf32, #tpu.memory_space<vmem>>, vector<8x128xf32>
      tpu.vector_store %arg8[%c0_87, %c0_88], %175 {strides = array<i32>} : memref<8x128xf32, #tpu.memory_space<vmem>>, vector<8x128xf32>,
    } else {
    }
    %c0 = arith.constant 0 : index
    %c0_1 = arith.constant 0 : index
    %c0_2 = arith.constant 0 : index
    %3 = vector.load %arg1[%c0, %c0_1, %c0_2] : memref<1x8x16xf32, #tpu.memory_space<vmem>>, vector<1x8x16xf32>
    %4 = vector.shape_cast %3 : vector<1x8x16xf32> to vector<8x16xf32>
    %c0_3 = arith.constant 0 : index
    %c0_4 = arith.constant 0 : index
    %5 = vector.load %arg8[%c0_3, %c0_4] : memref<8x128xf32, #tpu.memory_space<vmem>>, vector<8x128xf32>
    %c15 = arith.constant 15 : index
    %c0_5 = arith.constant 0 : index
    %6 = vector.load %arg3[%c15, %c0_5] : memref<16x128xf32, #tpu.memory_space<vmem>>, vector<1x16xf32>
    %cst = arith.constant 5.000000e-01 : f32
    %7 = vector.broadcast %cst : f32 to vector<1x16xf32>
    %8 = arith.cmpf ogt, %6, %7 : vector<1x16xf32>
    %9 = vector.extract_strided_slice %5 {offsets = [0, 0], sizes = [8, 16], strides = [1, 1]} : vector<8x128xf32> to vector<8x16xf32>
    %10 = vector.shape_cast %8 : vector<1x16xi1> to vector<1x16xi1>
    %11 = vector.broadcast %10 : vector<1x16xi1> to vector<8x16xi1>
    %12 = arith.select %11, %9, %4 : vector<8x16xi1>, vector<8x16xf32>
    %13 = arith.truncf %12 : vector<8x16xf32> to vector<8x16xbf16>
    %c0_6 = arith.constant 0 : index
    %c0_7 = arith.constant 0 : index
    %14 = vector.load %arg2[%c0_6, %c0_7] : memref<208x128xbf16, #tpu.memory_space<vmem>>, vector<16x128xbf16>
    %cst_8 = arith.constant dense<0.000000e+00> : vector<8x128xf32>
    %15 = tpu.matmul %13, %14, %cst_8 {dimension_numbers = #tpu.dot_dimension_numbers<[1], [0], [0], [1], [0, 0, 1, 1], [], []>} : vector<8x16xbf16>, vector<16x128xbf16>, vector<8x128xf32> -> vector<8x128xf32>
    %c0_9 = arith.constant 0 : index
    %c0_10 = arith.constant 0 : index
    %16 = vector.load %arg3[%c0_9, %c0_10] : memref<16x128xf32, #tpu.memory_space<vmem>>, vector<1x128xf32>
    %17 = vector.broadcast %16 : vector<1x128xf32> to vector<8x128xf32>
    %18 = arith.addf %15, %17 : vector<8x128xf32>
    %cst_11 = arith.constant 0.000000e+00 : f32
    %19 = vector.broadcast %cst_11 : f32 to vector<8x128xf32>
    %20 = arith.maximumf %18, %19 : vector<8x128xf32>
    %21 = vector.extract_strided_slice %20 {offsets = [0, 0], sizes = [8, 32], strides = [1, 1]} : vector<8x128xf32> to vector<8x32xf32>
    %c0_12 = arith.constant 0 : index
    %c0_13 = arith.constant 0 : index
    %c0_14 = arith.constant 0 : index
    %22 = vector.load %arg6[%c0_12, %c0_13, %c0_14] : memref<2x8x32xf32, #tpu.memory_space<vmem>>, vector<1x8x32xf32>
    %23 = vector.shape_cast %22 : vector<1x8x32xf32> to vector<8x32xf32>
    %c1 = arith.constant 1 : index
    %c0_15 = arith.constant 0 : index
    %c0_16 = arith.constant 0 : index
    %24 = vector.load %arg6[%c1, %c0_15, %c0_16] : memref<2x8x32xf32, #tpu.memory_space<vmem>>, vector<1x8x32xf32>
    %25 = vector.shape_cast %24 : vector<1x8x32xf32> to vector<8x32xf32>
    %c0_17 = arith.constant 0 : index
    %c0_18 = arith.constant 0 : index
    %c0_19 = arith.constant 0 : index
    %26 = vector.load %arg7[%c0_17, %c0_18, %c0_19] : memref<2x8x32xf32, #tpu.memory_space<vmem>>, vector<1x8x32xf32>
    %27 = vector.shape_cast %26 : vector<1x8x32xf32> to vector<8x32xf32>
    %c1_20 = arith.constant 1 : index
    %c0_21 = arith.constant 0 : index
    %c0_22 = arith.constant 0 : index
    %28 = vector.load %arg7[%c1_20, %c0_21, %c0_22] : memref<2x8x32xf32, #tpu.memory_space<vmem>>, vector<1x8x32xf32>
    %29 = vector.shape_cast %28 : vector<1x8x32xf32> to vector<8x32xf32>
    %30 = arith.truncf %23 : vector<8x32xf32> to vector<8x32xbf16>
    %c48 = arith.constant 48 : index
    %c0_23 = arith.constant 0 : index
    %31 = vector.load %arg2[%c48, %c0_23] : memref<208x128xbf16, #tpu.memory_space<vmem>>, vector<32x128xbf16>
    %cst_24 = arith.constant dense<0.000000e+00> : vector<8x128xf32>
    %32 = tpu.matmul %30, %31, %cst_24 {dimension_numbers = #tpu.dot_dimension_numbers<[1], [0], [0], [1], [0, 0, 1, 1], [], []>} : vector<8x32xbf16>, vector<32x128xbf16>, vector<8x128xf32> -> vector<8x128xf32>
    %33 = arith.truncf %25 : vector<8x32xf32> to vector<8x32xbf16>
    %c112 = arith.constant 112 : index
    %c0_25 = arith.constant 0 : index
    %34 = vector.load %arg2[%c112, %c0_25] : memref<208x128xbf16, #tpu.memory_space<vmem>>, vector<32x128xbf16>
    %cst_26 = arith.constant dense<0.000000e+00> : vector<8x128xf32>
    %35 = tpu.matmul %33, %34, %cst_26 {dimension_numbers = #tpu.dot_dimension_numbers<[1], [0], [0], [1], [0, 0, 1, 1], [], []>} : vector<8x32xbf16>, vector<32x128xbf16>, vector<8x128xf32> -> vector<8x128xf32>
    %c13 = arith.constant 13 : index
    %c0_27 = arith.constant 0 : index
    %36 = vector.load %arg3[%c13, %c0_27] : memref<16x128xf32, #tpu.memory_space<vmem>>, vector<1x128xf32>
    %c14 = arith.constant 14 : index
    %c0_28 = arith.constant 0 : index
    %37 = vector.load %arg3[%c14, %c0_28] : memref<16x128xf32, #tpu.memory_space<vmem>>, vector<1x128xf32>
    %38 = arith.truncf %21 : vector<8x32xf32> to vector<8x32xbf16>
    %c16 = arith.constant 16 : index
    %c0_29 = arith.constant 0 : index
    %39 = vector.load %arg2[%c16, %c0_29] : memref<208x128xbf16, #tpu.memory_space<vmem>>, vector<32x128xbf16>
    %cst_30 = arith.constant dense<0.000000e+00> : vector<8x128xf32>
    %40 = tpu.matmul %38, %39, %cst_30 {dimension_numbers = #tpu.dot_dimension_numbers<[1], [0], [0], [1], [0, 0, 1, 1], [], []>} : vector<8x32xbf16>, vector<32x128xbf16>, vector<8x128xf32> -> vector<8x128xf32>
    %c1_31 = arith.constant 1 : index
    %c0_32 = arith.constant 0 : index
    %41 = vector.load %arg3[%c1_31, %c0_32] : memref<16x128xf32, #tpu.memory_space<vmem>>, vector<1x128xf32>
    %42 = arith.addf %40, %32 : vector<8x128xf32>
    %43 = vector.broadcast %41 : vector<1x128xf32> to vector<8x128xf32>
    %44 = arith.addf %42, %43 : vector<8x128xf32>
    %45 = math.tanh %44 : vector<8x128xf32>
    %46 = vector.broadcast %36 : vector<1x128xf32> to vector<8x128xf32>
    %47 = arith.mulf %45, %46 : vector<8x128xf32>
    %48 = vector.broadcast %37 : vector<1x128xf32> to vector<8x128xf32>
    %49 = arith.addf %47, %48 : vector<8x128xf32>
    %50 = vector.extract_strided_slice %49 {offsets = [0, 0], sizes = [8, 32], strides = [1, 1]} : vector<8x128xf32> to vector<8x32xf32>
    %51 = vector.extract_strided_slice %49 {offsets = [0, 32], sizes = [8, 32], strides = [1, 1]} : vector<8x128xf32> to vector<8x32xf32>
    %52 = vector.extract_strided_slice %49 {offsets = [0, 64], sizes = [8, 32], strides = [1, 1]} : vector<8x128xf32> to vector<8x32xf32>
    %53 = vector.extract_strided_slice %49 {offsets = [0, 96], sizes = [8, 32], strides = [1, 1]} : vector<8x128xf32> to vector<8x32xf32>
    %54 = arith.mulf %51, %27 : vector<8x32xf32>
    %55 = arith.mulf %50, %52 : vector<8x32xf32>
    %56 = arith.addf %54, %55 : vector<8x32xf32>
    %57 = math.tanh %56 : vector<8x32xf32>
    %58 = arith.mulf %53, %57 : vector<8x32xf32>
    %59 = arith.truncf %58 : vector<8x32xf32> to vector<8x32xbf16>
    %c80 = arith.constant 80 : index
    %c0_33 = arith.constant 0 : index
    %60 = vector.load %arg2[%c80, %c0_33] : memref<208x128xbf16, #tpu.memory_space<vmem>>, vector<32x128xbf16>
    %cst_34 = arith.constant dense<0.000000e+00> : vector<8x128xf32>
    %61 = tpu.matmul %59, %60, %cst_34 {dimension_numbers = #tpu.dot_dimension_numbers<[1], [0], [0], [1], [0, 0, 1, 1], [], []>} : vector<8x32xbf16>, vector<32x128xbf16>, vector<8x128xf32> -> vector<8x128xf32>
    %c2 = arith.constant 2 : index
    %c0_35 = arith.constant 0 : index
    %62 = vector.load %arg3[%c2, %c0_35] : memref<16x128xf32, #tpu.memory_space<vmem>>, vector<1x128xf32>
    %63 = arith.addf %61, %35 : vector<8x128xf32>
    %64 = vector.broadcast %62 : vector<1x128xf32> to vector<8x128xf32>
    %65 = arith.addf %63, %64 : vector<8x128xf32>
    %66 = math.tanh %65 : vector<8x128xf32>
    %67 = vector.broadcast %36 : vector<1x128xf32> to vector<8x128xf32>
    %68 = arith.mulf %66, %67 : vector<8x128xf32>
    %69 = vector.broadcast %37 : vector<1x128xf32> to vector<8x128xf32>
    %70 = arith.addf %68, %69 : vector<8x128xf32>
    %71 = vector.extract_strided_slice %70 {offsets = [0, 0], sizes = [8, 32], strides = [1, 1]} : vector<8x128xf32> to vector<8x32xf32>
    %72 = vector.extract_strided_slice %70 {offsets = [0, 32], sizes = [8, 32], strides = [1, 1]} : vector<8x128xf32> to vector<8x32xf32>
    %73 = vector.extract_strided_slice %70 {offsets = [0, 64], sizes = [8, 32], strides = [1, 1]} : vector<8x128xf32> to vector<8x32xf32>
    %74 = vector.extract_strided_slice %70 {offsets = [0, 96], sizes = [8, 32], strides = [1, 1]} : vector<8x128xf32> to vector<8x32xf32>
    %75 = arith.mulf %72, %29 : vector<8x32xf32>
    %76 = arith.mulf %71, %73 : vector<8x32xf32>
    %77 = arith.addf %75, %76 : vector<8x32xf32>
    %78 = math.tanh %77 : vector<8x32xf32>
    %79 = arith.mulf %74, %78 : vector<8x32xf32>
    %c0_36 = arith.constant 0 : index
    %c0_37 = arith.constant 0 : index
    %c0_38 = arith.constant 0 : index
    %80 = vector.load %arg6[%c0_36, %c0_37, %c0_38] : memref<2x8x32xf32, #tpu.memory_space<vmem>>, vector<1x8x32xf32>
    %81 = vector.shape_cast %80 : vector<1x8x32xf32> to vector<8x32xf32>
    %82 = vector.shape_cast %58 : vector<8x32xf32> to vector<1x8x32xf32>
    tpu.vector_store %arg6[%c0_36, %c0_37, %c0_38], %82 {strides = array<i32>} : memref<2x8x32xf32, #tpu.memory_space<vmem>>, vector<1x8x32xf32>,
    %c1_39 = arith.constant 1 : index
    %c0_40 = arith.constant 0 : index
    %c0_41 = arith.constant 0 : index
    %83 = vector.load %arg6[%c1_39, %c0_40, %c0_41] : memref<2x8x32xf32, #tpu.memory_space<vmem>>, vector<1x8x32xf32>
    %84 = vector.shape_cast %83 : vector<1x8x32xf32> to vector<8x32xf32>
    %85 = vector.shape_cast %79 : vector<8x32xf32> to vector<1x8x32xf32>
    tpu.vector_store %arg6[%c1_39, %c0_40, %c0_41], %85 {strides = array<i32>} : memref<2x8x32xf32, #tpu.memory_space<vmem>>, vector<1x8x32xf32>,
    %c0_42 = arith.constant 0 : index
    %c0_43 = arith.constant 0 : index
    %c0_44 = arith.constant 0 : index
    %86 = vector.load %arg7[%c0_42, %c0_43, %c0_44] : memref<2x8x32xf32, #tpu.memory_space<vmem>>, vector<1x8x32xf32>
    %87 = vector.shape_cast %86 : vector<1x8x32xf32> to vector<8x32xf32>
    %88 = vector.shape_cast %56 : vector<8x32xf32> to vector<1x8x32xf32>
    tpu.vector_store %arg7[%c0_42, %c0_43, %c0_44], %88 {strides = array<i32>} : memref<2x8x32xf32, #tpu.memory_space<vmem>>, vector<1x8x32xf32>,
    %c1_45 = arith.constant 1 : index
    %c0_46 = arith.constant 0 : index
    %c0_47 = arith.constant 0 : index
    %89 = vector.load %arg7[%c1_45, %c0_46, %c0_47] : memref<2x8x32xf32, #tpu.memory_space<vmem>>, vector<1x8x32xf32>
    %90 = vector.shape_cast %89 : vector<1x8x32xf32> to vector<8x32xf32>
    %91 = vector.shape_cast %77 : vector<8x32xf32> to vector<1x8x32xf32>
    tpu.vector_store %arg7[%c1_45, %c0_46, %c0_47], %91 {strides = array<i32>} : memref<2x8x32xf32, #tpu.memory_space<vmem>>, vector<1x8x32xf32>,
    %cst_48 = arith.constant dense<0.000000e+00> : vector<8xf32>
    %92 = vector.multi_reduction <add>, %79, %cst_48 [1] : vector<8x32xf32> to vector<8xf32>
    %93 = vector.shape_cast %92 : vector<8xf32> to vector<8x1xf32>
    %cst_49 = arith.constant 3.200000e+01 : f32
    %94 = vector.broadcast %cst_49 : f32 to vector<8x1xf32>
    %95 = arith.divf %93, %94 : vector<8x1xf32>
    %96 = vector.broadcast %95 : vector<8x1xf32> to vector<8x32xf32>
    %97 = arith.subf %79, %96 : vector<8x32xf32>
    %98 = arith.mulf %97, %97 : vector<8x32xf32>
    %cst_50 = arith.constant dense<0.000000e+00> : vector<8xf32>
    %99 = vector.multi_reduction <add>, %98, %cst_50 [1] : vector<8x32xf32> to vector<8xf32>
    %100 = vector.shape_cast %99 : vector<8xf32> to vector<8x1xf32>
    %cst_51 = arith.constant 3.200000e+01 : f32
    %101 = vector.broadcast %cst_51 : f32 to vector<8x1xf32>
    %102 = arith.divf %100, %101 : vector<8x1xf32>
    %103 = vector.broadcast %95 : vector<8x1xf32> to vector<8x32xf32>
    %104 = arith.subf %79, %103 : vector<8x32xf32>
    %cst_52 = arith.constant 9.99999974E-6 : f32
    %105 = vector.broadcast %cst_52 : f32 to vector<8x1xf32>
    %106 = arith.addf %102, %105 : vector<8x1xf32>
    %107 = math.rsqrt %106 : vector<8x1xf32>
    %108 = vector.broadcast %107 : vector<8x1xf32> to vector<8x32xf32>
    %109 = arith.mulf %104, %108 : vector<8x32xf32>
    %c3 = arith.constant 3 : index
    %c0_53 = arith.constant 0 : index
    %110 = vector.load %arg3[%c3, %c0_53] : memref<16x128xf32, #tpu.memory_space<vmem>>, vector<1x32xf32>
    %111 = vector.broadcast %110 : vector<1x32xf32> to vector<8x32xf32>
    %112 = arith.mulf %109, %111 : vector<8x32xf32>
    %c4 = arith.constant 4 : index
    %c0_54 = arith.constant 0 : index
    %113 = vector.load %arg3[%c4, %c0_54] : memref<16x128xf32, #tpu.memory_space<vmem>>, vector<1x32xf32>
    %114 = vector.broadcast %113 : vector<1x32xf32> to vector<8x32xf32>
    %115 = arith.addf %112, %114 : vector<8x32xf32>
    %116 = arith.truncf %115 : vector<8x32xf32> to vector<8x32xbf16>
    %c144 = arith.constant 144 : index
    %c0_55 = arith.constant 0 : index
    %117 = vector.load %arg2[%c144, %c0_55] : memref<208x128xbf16, #tpu.memory_space<vmem>>, vector<32x128xbf16>
    %cst_56 = arith.constant dense<0.000000e+00> : vector<8x128xf32>
    %118 = tpu.matmul %116, %117, %cst_56 {dimension_numbers = #tpu.dot_dimension_numbers<[1], [0], [0], [1], [0, 0, 1, 1], [], []>} : vector<8x32xbf16>, vector<32x128xbf16>, vector<8x128xf32> -> vector<8x128xf32>
    %c5 = arith.constant 5 : index
    %c0_57 = arith.constant 0 : index
    %119 = vector.load %arg3[%c5, %c0_57] : memref<16x128xf32, #tpu.memory_space<vmem>>, vector<1x128xf32>
    %120 = vector.broadcast %119 : vector<1x128xf32> to vector<8x128xf32>
    %121 = arith.addf %118, %120 : vector<8x128xf32>
    %122 = math.tanh %121 : vector<8x128xf32>
    %123 = vector.extract_strided_slice %122 {offsets = [0, 0], sizes = [8, 32], strides = [1, 1]} : vector<8x128xf32> to vector<8x32xf32>
    %124 = arith.truncf %123 : vector<8x32xf32> to vector<8x32xbf16>
    %c176 = arith.constant 176 : index
    %c0_58 = arith.constant 0 : index
    %125 = vector.load %arg2[%c176, %c0_58] : memref<208x128xbf16, #tpu.memory_space<vmem>>, vector<32x128xbf16>
    %cst_59 = arith.constant dense<0.000000e+00> : vector<8x128xf32>
    %126 = tpu.matmul %124, %125, %cst_59 {dimension_numbers = #tpu.dot_dimension_numbers<[1], [0], [0], [1], [0, 0, 1, 1], [], []>} : vector<8x32xbf16>, vector<32x128xbf16>, vector<8x128xf32> -> vector<8x128xf32>
    %c6 = arith.constant 6 : index
    %c0_60 = arith.constant 0 : index
    %127 = vector.load %arg3[%c6, %c0_60] : memref<16x128xf32, #tpu.memory_space<vmem>>, vector<1x128xf32>
    %128 = vector.broadcast %127 : vector<1x128xf32> to vector<8x128xf32>
    %129 = arith.addf %126, %128 : vector<8x128xf32>
    %130 = math.tanh %129 : vector<8x128xf32>
    %c7 = arith.constant 7 : index
    %c0_61 = arith.constant 0 : index
    %131 = vector.load %arg3[%c7, %c0_61] : memref<16x128xf32, #tpu.memory_space<vmem>>, vector<1x128xf32>
    %132 = vector.broadcast %131 : vector<1x128xf32> to vector<8x128xf32>
    %133 = arith.mulf %130, %132 : vector<8x128xf32>
    %134 = arith.addf %133, %5 : vector<8x128xf32>
    %c0_62 = arith.constant 0 : index
    %c0_63 = arith.constant 0 : index
    %135 = vector.load %arg8[%c0_62, %c0_63] : memref<8x128xf32, #tpu.memory_space<vmem>>, vector<8x128xf32>
    tpu.vector_store %arg8[%c0_62, %c0_63], %134 {strides = array<i32>} : memref<8x128xf32, #tpu.memory_space<vmem>>, vector<8x128xf32>,
    %136 = vector.extract_strided_slice %4 {offsets = [0, 2], sizes = [8, 1], strides = [1, 1]} : vector<8x16xf32> to vector<8x1xf32>
    %cst_64 = arith.constant 9.99999997E-7 : f32
    %137 = vector.broadcast %cst_64 : f32 to vector<8x1xf32>
    %138 = arith.cmpf olt, %136, %137 : vector<8x1xf32>
    %cst_65 = arith.constant 0.000000e+00 : f32
    %139 = vector.shape_cast %138 : vector<8x1xi1> to vector<8x1xi1>
    %140 = vector.broadcast %139 : vector<8x1xi1> to vector<8x128xi1>
    %141 = vector.broadcast %cst_65 : f32 to vector<8x128xf32>
    %142 = arith.select %140, %141, %134 : vector<8x128xi1>, vector<8x128xf32>
    %c0_66 = arith.constant 0 : index
    %c0_67 = arith.constant 0 : index
    %c0_68 = arith.constant 0 : index
    %143 = vector.load %arg4[%c0_66, %c0_67, %c0_68] : memref<1x8x128xf32, #tpu.memory_space<vmem>>, vector<1x8x128xf32>
    %144 = vector.shape_cast %143 : vector<1x8x128xf32> to vector<8x128xf32>
    %145 = vector.shape_cast %142 : vector<8x128xf32> to vector<1x8x128xf32>
    tpu.vector_store %arg4[%c0_66, %c0_67, %c0_68], %145 {strides = array<i32>} : memref<1x8x128xf32, #tpu.memory_space<vmem>>, vector<1x8x128xf32>,
    %c7_i32 = arith.constant 7 : i32
    %146 = arith.cmpi eq, %arg0, %c7_i32 : i32
    %147 = arith.extui %146 : i1 to i32
    %c0_i32_69 = arith.constant 0 : i32
    %148 = arith.cmpi ne, %147, %c0_i32_69 : i32
    scf.if %148 {
      %c0_70 = arith.constant 0 : index
      %c0_71 = arith.constant 0 : index
      %c0_72 = arith.constant 0 : index
      %149 = vector.load %arg5[%c0_70, %c0_71, %c0_72] : memref<4x8x32xf32, #tpu.memory_space<vmem>>, vector<1x8x32xf32>
      %150 = vector.shape_cast %149 : vector<1x8x32xf32> to vector<8x32xf32>
      %151 = vector.shape_cast %58 : vector<8x32xf32> to vector<1x8x32xf32>
      tpu.vector_store %arg5[%c0_70, %c0_71, %c0_72], %151 {strides = array<i32>} : memref<4x8x32xf32, #tpu.memory_space<vmem>>, vector<1x8x32xf32>,
      %c1_73 = arith.constant 1 : index
      %c0_74 = arith.constant 0 : index
      %c0_75 = arith.constant 0 : index
      %152 = vector.load %arg5[%c1_73, %c0_74, %c0_75] : memref<4x8x32xf32, #tpu.memory_space<vmem>>, vector<1x8x32xf32>
      %153 = vector.shape_cast %152 : vector<1x8x32xf32> to vector<8x32xf32>
      %154 = vector.shape_cast %79 : vector<8x32xf32> to vector<1x8x32xf32>
      tpu.vector_store %arg5[%c1_73, %c0_74, %c0_75], %154 {strides = array<i32>} : memref<4x8x32xf32, #tpu.memory_space<vmem>>, vector<1x8x32xf32>,
      %c2_76 = arith.constant 2 : index
      %c0_77 = arith.constant 0 : index
      %c0_78 = arith.constant 0 : index
      %155 = vector.load %arg5[%c2_76, %c0_77, %c0_78] : memref<4x8x32xf32, #tpu.memory_space<vmem>>, vector<1x8x32xf32>
      %156 = vector.shape_cast %155 : vector<1x8x32xf32> to vector<8x32xf32>
      %157 = vector.shape_cast %56 : vector<8x32xf32> to vector<1x8x32xf32>
      tpu.vector_store %arg5[%c2_76, %c0_77, %c0_78], %157 {strides = array<i32>} : memref<4x8x32xf32, #tpu.memory_space<vmem>>, vector<1x8x32xf32>,
      %c3_79 = arith.constant 3 : index
      %c0_80 = arith.constant 0 : index
      %c0_81 = arith.constant 0 : index
      %158 = vector.load %arg5[%c3_79, %c0_80, %c0_81] : memref<4x8x32xf32, #tpu.memory_space<vmem>>, vector<1x8x32xf32>
      %159 = vector.shape_cast %158 : vector<1x8x32xf32> to vector<8x32xf32>
      %160 = vector.shape_cast %77 : vector<8x32xf32> to vector<1x8x32xf32>
      tpu.vector_store %arg5[%c3_79, %c0_80, %c0_81], %160 {strides = array<i32>} : memref<4x8x32xf32, #tpu.memory_space<vmem>>, vector<1x8x32xf32>,
    } else {
    }
    return
  }
  func.func @transform_0(%arg0: i32) -> (i32, i32, i32) {
    %c0_i32 = arith.constant 0 : i32
    %c0_i32_0 = arith.constant 0 : i32
    %c0_i32_1 = arith.constant 0 : i32
    return %arg0, %c0_i32, %c0_i32_0 : i32, i32, i32
  }
  func.func @transform_1(%arg0: i32) -> (i32, i32) {
    %c0_i32 = arith.constant 0 : i32
    %c0_i32_0 = arith.constant 0 : i32
    %c0_i32_1 = arith.constant 0 : i32
    return %c0_i32, %c0_i32_0 : i32, i32
  }
  func.func @transform_2(%arg0: i32) -> (i32, i32) {
    %c0_i32 = arith.constant 0 : i32
    %c0_i32_0 = arith.constant 0 : i32
    %c0_i32_1 = arith.constant 0 : i32
    return %c0_i32, %c0_i32_0 : i32, i32
  }
  func.func @transform_3(%arg0: i32) -> (i32, i32, i32) {
    %c0_i32 = arith.constant 0 : i32
    %c0_i32_0 = arith.constant 0 : i32
    %c0_i32_1 = arith.constant 0 : i32
    return %arg0, %c0_i32, %c0_i32_0 : i32, i32, i32
  }
  func.func @transform_4(%arg0: i32) -> (i32, i32, i32) {
    %c0_i32 = arith.constant 0 : i32
    %c0_i32_0 = arith.constant 0 : i32
    %c0_i32_1 = arith.constant 0 : i32
    %c0_i32_2 = arith.constant 0 : i32
    return %c0_i32, %c0_i32_0, %c0_i32_1 : i32, i32, i32
  }
}

</mosaic_0001>

<bundles_post_ra>
// kernel: lstm_forward.1
= control target key start
LH: loop header
LB: loop body
LE: loop exit
PB: predicated region body
PF: predicated region fallthrough
CT: control target
= control target key end

     0   :  { %s1104_s15 = smov 0   ;;  %s1311_s0 = inlined_call_operand.vmem [shape: f32[8,8,16], index: 0, kind: input, shape index: {}]   ;;  %s1312_s1 = inlined_call_operand.vmem [shape: bf16[208,128], index: 1, kind: input, shape index: {}]   ;;  %s1313_s2 = inlined_call_operand.vmem [shape: f32[16,128], index: 2, kind: input, shape index: {}]   ;;  %s1314_s3 = inlined_call_operand.vmem [shape: f32[8,8,128], index: 3, kind: output, shape index: {0}]   ;;  %s1315_s4 = inlined_call_operand.vmem [shape: f32[4,8,32], index: 4, kind: output, shape index: {1}]  }
   0x1 LB: > { %s1110_s16 = sadd.s32 4294967295, %s1070_s15   ;;  %p902_p0 = scmp.ge.s32.totalorder %s1070_s15, 1  ;;  %s1070_s15 = sphi %s1104_s15, %s15_s15  }
   0x2   : > { %p159_p1 = scmp.lt.s32.totalorder %s1070_s15, 9 }
   0x4   : > { %p160_p2 = pnand %p902_p0, %p159_p1 }
   0x5   : > { %p183_p3 = scmp.lt.s32.totalorder (!%p160_p2), %s1110_s16, 7  ;;  %p905_p4 = scmp.ne.s32.totalorder (!%p160_p2), %s1110_s16, 0 }
   0x6   : > { %163 = sbr.rel (%p160_p2) target bundleno = 2672 (0xa70), region = 32 }
   0xd   : > { %s184_s17 = scalar_select %p183_p3, %s1110_s16, 7 }
   0xe   : > { %195 = sbr.rel (%p905_p4) target bundleno = 21 (0x15), region = 36  ;;  %v906_v0 = vld [vmem:[%s1313_s2 + $0x9] ss:$0 sm:$0xff] (!%p905_p4)  ;;  %vm201_vm0 = vcmask (!%p905_p4), 261120   ;;  %v907_v1 = vld [vmem:[%s1313_s2 + $0xa] ss:$0 sm:$0xff] (!%p905_p4) }
   0xf   : > { %s903_s18 = sshll.u32 %s184_s17, 3  ;;  %202 = vst.msk [vmem:[#allocation2] sm:$0xff] (!%p905_p4), %vm201_vm0, %v906_v0  ;;  %209 = vst.msk [vmem:[#allocation2 + $0x8] sm:$0xff] (!%p905_p4), %vm201_vm0, %v907_v1  ;;  %v908_v2 = vld [vmem:[%s1313_s2 + $0xb] ss:$0 sm:$0xff] (!%p905_p4) }
  0x10   : > { %s1119_s21 = scalar_lea.vmem %s1311_s0, %s903_s18  ;;  %s1124_s24 = scalar_lea.vmem %s1314_s3, %s903_s18  ;;  %v909_v3 = vld [vmem:[%s1313_s2 + $0xc] ss:$0 sm:$0xff] (!%p905_p4)  ;;  %v910_v4 = vld [vmem:[%s1313_s2 + $0x8] ss:$0 sm:$0xff] (!%p905_p4)  ;;  %215 = vst.msk [vmem:[#allocation3] sm:$0xff] (!%p905_p4), %vm201_vm0, %v908_v2 }
  0x11   : > { %222 = vst.msk [vmem:[#allocation3 + $0x8] sm:$0xff] (!%p905_p4), %vm201_vm0, %v909_v3  ;;  %228 = vst [vmem:[#allocation4] sm:$0xff] (!%p905_p4), %v910_v4 }
  0x15 PF: > { %v1037_v5 = vld [vmem:[%s1312_s1] sm:$0xff]   ;;  %v234_v6 = vlaneseq  ;;  %v1072_v7 = vmov 0.0   ;;  %v231_v8 = vld [vmem:[%s1313_s2 + $0xf] sm:$0x1]  ;;  %vm1073_vm1 = vmmov 0   ;;  %v1038_v10 = vld [vmem:[%s1312_s1 + $0x18] sm:$0xff]  }
  0x16   : > { %967 = vmatprep.subr.bf16.mxu0 %v1072_v7  ;;  %973 = vmatprep.subr.bf16.mxu1 %v1072_v7  ;;  %vm232_vm2 = vcmp.gt.f32.partialorder %v231_v8, 0.5  ;;  %v1074_v11 = vmov 0   ;;  %v1160_v13 = vld [vmem:[%s1119_s21] sm:$0xff]  ;;  %vm254_vm3 = vcmask 130048   ;;  %vm322_vm4 = vcmask 261120   ;;  %v1040_v20 = vld [vmem:[%s1312_s1 + $0x8] sm:$0xff]  }
  0x17   : > { %968 = vmatpush3.bf16.msra.mxu0 %v1037_v5  ;;  %969 = vmatprep.mubr.msk.bf16.mxu0 %vm1073_vm1, %v1072_v7  ;;  %v235_v9 = vshrl.u32 %v234_v6, 7  ;;  %v233_v12 = vsel %vm232_vm2, 1, %v1074_v11  ;;  %v1039_v16 = vld [vmem:[%s1312_s1 + $0x20] sm:$0xff]   ;;  %v1041_v23 = vld [vmem:[%s1312_s1 + $0x10] sm:$0xff]   ;;  %v924_v43 = vld [vmem:[%s1313_s2 + $0xd] ss:$0 sm:$0xff] }
  0x18   : > { %977 = vmatprep.mubr.msk.bf16.mxu1 %vm1073_vm1, %v1072_v7  ;;  %981 = vmatprep.subr.bf16.mxu0 %v1072_v7  ;;  %v1162_v14 = vld [vmem:[#allocation4] sm:$0xff]  ;;  %v925_v45 = vld [vmem:[%s1313_s2 + $0xe] ss:$0 sm:$0xff]  ;;  %s1075_s6 = smov 64   ;;  %v302_v48 = vld [vmem:[#allocation3] sm:$0xff]  ;;  %s1076_s7 = smov 32  }
  0x19   : > { %v236_v15 = vsub.s32 0, %v235_v9  ;;  %974 = vmatpush3.bf16.msra.mxu1 %v1038_v10  ;;  %v299_v17 = vld [vmem:[#allocation2] sm:$0xff]  ;;  %v1042_v55 = vld [vmem:[%s1312_s1 + $0x38] sm:$0xff]   ;;  %v301_v57 = vld [vmem:[#allocation2 + $0x8] sm:$0xff]  ;;  %s1077_s22 = smov 96   ;;  %p941_p5 = scmp.ne.s32.totalorder %s1110_s16, 7 }
  0x1a   : > { %975 = vmatprep.subr.bf16.mxu1 %v1072_v7  ;;  %v305_v19 = vpack.c.bf16 %v299_v17, %v299_v17  ;;  %v911_v24 = vld [vmem:[%s1313_s2] ss:$0 sm:$0xff]  ;;  %v923_v36 = vld [vmem:[%s1313_s2 + $0x1] ss:$0 sm:$0xff]  ;;  %v366_v58 = vpack.c.bf16 %v301_v57, %v301_v57  ;;  %v1044_v59 = vld [vmem:[%s1312_s1 + $0x28] sm:$0xff]  }
  0x1b   : > { %v237_v18 = vrot.slane %v233_v12, %v236_v15  ;;  %v1043_v56 = vld [vmem:[%s1312_s1 + $0x40] sm:$0xff]   ;;  %v1045_v61 = vld [vmem:[%s1312_s1 + $0x30] sm:$0xff]   ;;  %v304_v1 = vld [vmem:[#allocation3 + $0x8] sm:$0xff]  ;;  %vm820_vm6 = vcmp.lt.f32.partialorder %v1160_v13, 1e-06 }
  0x1c   : > { %v929_v8 = vld [vmem:[%s1313_s2 + $0x2] ss:$0 sm:$0xff] }
  0x1d   : > { %vm238_vm5 = vcmp.eq.s32.totalorder %v237_v18, 1  ;;  %976 = vmatpush3.bf16.msra.mxu1 %v1039_v16 }
  0x1e   : > { %v239_v21 = vsel %vm238_vm5, %v1162_v14, %v1160_v13  ;;  %989 = vmatprep.subr.bf16.mxu1 %v1072_v7  ;;  %v932_v13 = vld [vmem:[%s1313_s2 + $0x5] ss:$0 sm:$0xff] }
  0x1f   : > { %v240_v22 = vpack.c.bf16 %v239_v21, %v239_v21 }
  0x20   : > { %978 = vmatmul.mubr.msk.bf16.vlgmr.msra.gmra.mrb[0].mxu1 %vm322_vm4, %v305_v19 }
  0x21   : > { %970 = vmatmul.mubr.msk.bf16.vlgmr.msra.gmra.mrb[0].mxu0 %vm254_vm3, %v240_v22  ;;  %990 = vmatpush3.bf16.msra.mxu1 %v1040_v20 }
  0x22   : > { %991 = vmatprep.subr.bf16.mxu1 %v1072_v7  ;;  %993 = vmatprep.mubr.msk.bf16.mxu1 %vm1073_vm1, %v1072_v7 }
  0x23   : > { %985 = vmatprep.mubr.msk.bf16.mxu0 %vm1073_vm1, %v1072_v7  ;;  %982 = vmatpush3.bf16.msra.mxu0 %v1042_v55  ;;  %v821_v55 = vsel %vm820_vm6, 1, %v1074_v11  ;;  %v1049_v11 = vld [vmem:[%s1312_s1 + $0x60] sm:$0xff]  }
  0x24   : > { %983 = vmatprep.subr.bf16.mxu0 %v1072_v7 }
  0x25   : > { %992 = vmatpush3.bf16.msra.mxu1 %v1041_v23 }
  0x26   : > { %1005 = vmatprep.subr.bf16.mxu1 %v1072_v7 }
  0x27   : > { %984 = vmatpush3.bf16.msra.mxu0 %v1043_v56 }
  0x28   : > { %997 = vmatprep.subr.bf16.mxu0 %v1072_v7 }
  0x2a   : > { %986 = vmatmul.mubr.msk.bf16.vlgmr.msra.gmra.mrb[4].mxu0 %vm322_vm4, %v366_v58 }
  0x2b   : > { %998 = vmatpush3.bf16.msra.mxu0 %v1044_v59  ;;  %1001 = vmatprep.mubr.msk.bf16.mxu0 %vm1073_vm1, %v1072_v7  ;;  %v1048_v59 = vld [vmem:[%s1312_s1 + $0x58] sm:$0xff]  }
  0x2c   : > { %999 = vmatprep.subr.bf16.mxu0 %v1072_v7 }
  0x2f   : > { %1000 = vmatpush3.bf16.msra.mxu0 %v1045_v61 }
  0x30   : > { %1013 = vmatprep.subr.bf16.mxu0 %v1072_v7 }
  0xf3   : > { %v360_v25 = vpop.f32.mrb[0].mxu1 }
  0xf4   : > { %v292_v26 = vpop.f32.mrb[0].mxu0  ;;  %v979_v27 = vpop.f32.mrb[1].mxu1 }
  0xf5   : > { %v293_v28 = vadd.f32 %v911_v24, %v292_v26  ;;  %v971_v29 = vpop.f32.mrb[1].mxu0  ;;  %v363_v30 = vpop.f32.mrb[2].mxu1 }
  0xf6   : > { %v295_v31 = vpop.f32.mrb[2].mxu0  ;;  %v980_v32 = vpop.f32.mrb[3].mxu1 }
  0xf7   : > { %v298_v33 = vmax.f32 %v293_v28, 0.0  ;;  %v972_v34 = vpop.f32.mrb[3].mxu0 }
  0xf9   : > { %v428_v35 = vpack.c.bf16 %v298_v33, %v298_v33 }
  0xfb   : > { %994 = vmatmul.mubr.msk.bf16.vlgmr.msra.gmra.mrb[4].mxu1 %vm322_vm4, %v428_v35 }
  0xfc   : > { %1009 = vmatprep.mubr.msk.bf16.mxu1 %vm1073_vm1, %v1072_v7 }
  0xfd   : > { %v420_v2 = vpop.f32.mrb[4].mxu0 }
  0xfe   : > { %v987_v3 = vpop.f32.mrb[5].mxu0 }
  0xff   : > { %v423_v4 = vpop.f32.mrb[6].mxu0 }
 0x100   : > { %v988_v5 = vpop.f32.mrb[7].mxu0 }
 0x1ce   : > { %v483_v37 = vpop.f32.mrb[4].mxu1 }
 0x1cf   : > { %v484_v38 = vadd.f32 %v483_v37, %v360_v25  ;;  %v995_v39 = vpop.f32.mrb[5].mxu1 }
 0x1d0   : > { %v486_v40 = vpop.f32.mrb[6].mxu1  ;;  %v931_v39 = vld [vmem:[%s1313_s2 + $0x4] ss:$0 sm:$0xff] }
 0x1d1   : > { %v493_v41 = vadd.f32 %v923_v36, %v484_v38  ;;  %v996_v42 = vpop.f32.mrb[7].mxu1  ;;  %v930_v36 = vld [vmem:[%s1313_s2 + $0x3] ss:$0 sm:$0xff]  ;;  %v1078_v40 = vmov 2  }
 0x1d2   : > { %1036 = vset.pattern.permute.xlu0 %v1078_v40  ;;  %v1047_v42 = vld [vmem:[%s1312_s1 + $0x50] sm:$0xff]  }
 0x1d3   : > { %1050 = vtanh.f32 %v493_v41  ;;  %v1046_v41 = vld [vmem:[%s1312_s1 + $0x48] sm:$0xff]  }
 0x1d4   : > { %1006 = vmatpush3.bf16.msra.mxu1 %v1046_v41 }
 0x1d5   : > { %1007 = vmatprep.subr.bf16.mxu1 %v1072_v7 }
 0x1d8   : > { %1008 = vmatpush3.bf16.msra.mxu1 %v1047_v42 }
 0x1dd   : > { %v1051_v44 = vpop.eup %1050 }
 0x1de   : > { %v499_v46 = vmul.f32 %v1051_v44, %v924_v43 }
 0x1e0   : > { %v504_v47 = vadd.f32 %v925_v45, %v499_v46 }
 0x1e2   : > { %511 = vrot.lane.b32.xlu0 %v504_v47, %s1075_s6 }
 0x1e6   : > { %506 = vrot.lane.b32.xlu0 %v302_v48, %s1076_s7 }
 0x254   : > { %v512_v49 = vpop.permute.xlu0 %511 }
 0x255   : > { %v514_v50 = vmul.f32 %v512_v49, %v504_v47 }
 0x257   : > { %516 = vrot.lane.b32.xlu1 %v514_v50, %s1076_s7 }
 0x258   : > { %v507_v51 = vpop.permute.xlu0 %506 }
 0x259   : > { %v509_v52 = vmul.f32 %v507_v51, %v504_v47 }
 0x2c9   : > { %v517_v53 = vpop.permute.xlu1 %516 }
 0x2ca   : > { %v1202_v54 = vadd.f32 %v517_v53, %v509_v52 }
 0x2cc   : > { %1052 = vtanh.f32 %v1202_v54 }
 0x2d6   : > { %v1053_v60 = vpop.eup %1052 }
 0x2d7   : > { %522 = vrot.lane.b32.xlu1 %v1053_v60, %s1075_s6 }
 0x349   : > { %v523_v62 = vpop.permute.xlu1 %522 }
 0x34a   : > { %v525_v63 = vmul.f32 %v523_v62, %v504_v47 }
 0x34c   : > { %v526_v0 = vpack.c.bf16 %v525_v63, %v525_v63 }
 0x34e   : > { %533 = vrot.lane.b32.xlu0 %v526_v0, %s1076_s7 }
 0x352   : > { %599 = vrot.lane.b32.xlu0 %v304_v1, %s1076_s7 }
 0x3c0   : > { %v534_v6 = vpop.permute.xlu0 %533 }
 0x3c1   : > { %1002 = vmatmul.mubr.msk.bf16.vlgmr.msra.gmra.mrb[8].mxu0 %vm322_vm4, %v534_v6 }
 0x3c2   : > { %1017 = vmatprep.mubr.msk.bf16.mxu0 %vm1073_vm1, %v1072_v7  ;;  %1014 = vmatpush3.bf16.msra.mxu0 %v1048_v59 }
 0x3c3   : > { %1015 = vmatprep.subr.bf16.mxu0 %v1072_v7  ;;  %v936_v7 = vld [vmem:[%s1313_s2 + $0x6] ss:$0 sm:$0xff] }
 0x3c4   : > { %v600_v23 = vpop.permute.xlu0 %599 }
 0x3c6   : > { %1016 = vmatpush3.bf16.msra.mxu0 %v1049_v11 }
 0x494   : > { %v584_v9 = vpop.f32.mrb[8].mxu0 }
 0x495   : > { %v585_v10 = vadd.f32 %v584_v9, %v420_v2  ;;  %v1003_v12 = vpop.f32.mrb[9].mxu0  ;;  %v940_v9 = vld [vmem:[%s1313_s2 + $0x7] ss:$0 sm:$0xff] }
 0x496   : > { %v587_v15 = vpop.f32.mrb[10].mxu0 }
 0x497   : > { %v594_v16 = vadd.f32 %v929_v8, %v585_v10  ;;  %v1004_v17 = vpop.f32.mrb[11].mxu0 }
 0x499   : > { %1054 = vtanh.f32 %v594_v16 }
 0x4a3   : > { %v1055_v18 = vpop.eup %1054 }
 0x4a4   : > { %v596_v19 = vmul.f32 %v1055_v18, %v924_v43 }
 0x4a6   : > { %v597_v20 = vadd.f32 %v925_v45, %v596_v19 }
 0x4a8   : > { %604 = vrot.lane.b32.xlu1 %v597_v20, %s1075_s6  ;;  %v602_v24 = vmul.f32 %v600_v23, %v597_v20 }
 0x51a   : > { %v605_v21 = vpop.permute.xlu1 %604 }
 0x51b   : > { %v607_v22 = vmul.f32 %v605_v21, %v597_v20 }
 0x51d   : > { %609 = vrot.lane.b32.xlu1 %v607_v22, %s1076_s7 }
 0x58f   : > { %v610_v25 = vpop.permute.xlu1 %609 }
 0x590   : > { %v612_v26 = vadd.f32 %v610_v25, %v602_v24 }
 0x592   : > { %1056 = vtanh.f32 %v612_v26 }
 0x59c   : > { %v1057_v27 = vpop.eup %1056 }
 0x59d   : > { %615 = vrot.lane.b32.xlu0 %v1057_v27, %s1075_s6 }
 0x60f   : > { %v616_v28 = vpop.permute.xlu0 %615 }
 0x610   : > { %v618_v29 = vmul.f32 %v616_v28, %v597_v20 }
 0x612   : > { %625 = vrot.lane.b32.xlu1 %v618_v29, %s1076_s7 }
 0x684   : > { %v1237_v30 = vpop.permute.xlu1 %625 }
 0x685   : > { %628 = vst.msk [vmem:[#allocation2 + $0x8] sm:$0xff] %vm322_vm4, %v1237_v30  ;;  %v639_v31 = vsel %vm322_vm4, %v1237_v30, 0.0  ;;  %942 = vst.msk [vmem:[%s1315_s4 + $0x8] sm:$0xff] (!%p941_p5), %vm322_vm4, %v1237_v30 }
 0x686   : > { %640 = vadd.xlane.f32.xlu0 %v639_v31 }
 0x69c   : > { %663 = vrot.lane.b32.xlu0 %v930_v36, %s1077_s22 }
 0x713   : > { %v641_v32 = vpop.xlane.xlu0 %640 }
 0x714   : > { %v643_v33 = vmul.f32 0.03125, %v641_v32 }
 0x716   : > { %v644_v34 = vsub.f32 %v618_v29, %v643_v33 }
 0x717   : > { %v664_v50 = vpop.permute.xlu0 %663 }
 0x718   : > { %v645_v35 = vmul.f32 %v644_v34, %v644_v34 }
 0x71a   : > { %647 = vrot.lane.b32.xlu1 %v645_v35, %s1076_s7 }
 0x78c   : > { %v648_v37 = vpop.permute.xlu1 %647 }
 0x78d   : > { %v650_v38 = vsel %vm322_vm4, %v648_v37, 0.0 }
 0x78e   : > { %651 = vadd.xlane.f32.xlu1 %v650_v38 }
 0x79f   : > { %673 = vrot.lane.b32.xlu1 %v931_v39, %s1077_s22 }
 0x7a3   : > { %620 = vrot.lane.b32.xlu1 %v525_v63, %s1076_s7 }
 0x7a7   : > { %630 = vrot.lane.b32.xlu1 %v1202_v54, %s1077_s22 }
 0x81b   : > { %v652_v43 = vpop.xlane.xlu1 %651 }
 0x81c   : > { %v653_v44 = vmul.f32 0.03125, %v652_v43 }
 0x81e   : > { %v654_v45 = vadd.f32 1e-05, %v653_v44 }
 0x81f   : > { %v674_v46 = vpop.permute.xlu1 %673 }
 0x820   : > { %1058 = vrsqrt.f32 %v654_v45 }
 0x823   : > { %v621_v47 = vpop.permute.xlu1 %620 }
 0x824   : > { %623 = vst.msk [vmem:[#allocation2] sm:$0xff] %vm322_vm4, %v621_v47  ;;  %832 = vst.msk [vmem:[%s1315_s4] sm:$0xff] (!%p941_p5), %vm322_vm4, %v621_v47 }
 0x827   : > { %v631_v48 = vpop.permute.xlu1 %630 }
 0x828   : > { %633 = vst.msk [vmem:[#allocation3] sm:$0xff] %vm322_vm4, %v631_v48  ;;  %943 = vst.msk [vmem:[%s1315_s4 + $0x10] sm:$0xff] (!%p941_p5), %vm322_vm4, %v631_v48 }
 0x82a   : > { %v1059_v49 = vpop.eup %1058 }
 0x82b   : > { %v656_v51 = vmul.f32 %v1059_v49, %v644_v34 }
 0x82d   : > { %v666_v52 = vmul.f32 %v664_v50, %v656_v51 }
 0x82f   : > { %v676_v53 = vadd.f32 %v674_v46, %v666_v52 }
 0x831   : > { %v677_v54 = vpack.c.bf16 %v676_v53, %v676_v53 }
 0x833   : > { %688 = vrot.lane.b32.xlu0 %v677_v54, %s1076_s7 }
 0x837   : > { %823 = vperm.xlu0 %1036, %v821_v55  }
 0x83b   : > { %635 = vrot.lane.b32.xlu0 %v612_v26, %s1077_s22 }
 0x8a5   : > { %v689_v56 = vpop.permute.xlu0 %688 }
 0x8a6   : > { %1010 = vmatmul.mubr.msk.bf16.vlgmr.msra.gmra.mrb[8].mxu1 %vm322_vm4, %v689_v56 }
 0x8b6   : > { %v824_v57 = vpop.permute.xlu0 %823 }
 0x8b7   : > { %vm825_vm7 = vcmp.eq.s32.totalorder %v824_v57, 1 }
 0x8ba   : > { %v636_v58 = vpop.permute.xlu0 %635 }
 0x8bb   : > { %638 = vst.msk [vmem:[#allocation3 + $0x8] sm:$0xff] %vm322_vm4, %v636_v58  ;;  %944 = vst.msk [vmem:[%s1315_s4 + $0x18] sm:$0xff] (!%p941_p5), %vm322_vm4, %v636_v58 }
 0x979   : > { %v739_v60 = vpop.f32.mrb[8].mxu1 }
 0x97a   : > { %v740_v61 = vadd.f32 %v932_v13, %v739_v60  ;;  %v1011_v62 = vpop.f32.mrb[9].mxu1 }
 0x97b   : > { %v742_v63 = vpop.f32.mrb[10].mxu1 }
 0x97c   : > { %1060 = vtanh.f32 %v740_v61  ;;  %v1012_v0 = vpop.f32.mrb[11].mxu1 }
 0x986   : > { %v1061_v1 = vpop.eup %1060 }
 0x987   : > { %v746_v2 = vpack.c.bf16 %v1061_v1, %v1061_v1 }
 0x989   : > { %1018 = vmatmul.mubr.msk.bf16.vlgmr.msra.gmra.mrb[12].mxu0 %vm322_vm4, %v746_v2 }
 0xa5c   : > { %v805_v3 = vpop.f32.mrb[12].mxu0 }
 0xa5d   : > { %v806_v4 = vadd.f32 %v936_v7, %v805_v3  ;;  %v1019_v5 = vpop.f32.mrb[13].mxu0 }
 0xa5e   : > { %v808_v6 = vpop.f32.mrb[14].mxu0 }
 0xa5f   : > { %1062 = vtanh.f32 %v806_v4  ;;  %v1020_v8 = vpop.f32.mrb[15].mxu0 }
 0xa69   : > { %v1063_v10 = vpop.eup %1062  ;;  %831 = sbr.rel (%p941_p5) target bundleno = 2672 (0xa70), region = 40 }
 0xa6a   : > { %v817_v12 = vmul.f32 %v1063_v10, %v940_v9 }
 0xa6c   : > { %v818_v15 = vadd.f32 %v817_v12, %v1162_v14 }
 0xa6e   : > { %819 = vst [vmem:[#allocation4] sm:$0xff] %v818_v15  ;;  %v826_v16 = vsel %vm825_vm7, 0.0, %v818_v15 }
 0xa6f   : > { %827 = vst [vmem:[%s1124_s24] sm:$0xff] %v826_v16 }
 0xa70 PF: > { %s15_s15 = sadd.s32 1, %s1070_s15  }
 0xa71   : > { %p12_p6 = scmp.ge.s32.totalorder %s15_s15, 10  }
 0xa73   :  { %14 = sbr.rel (!%p12_p6) target bundleno = 1 (0x1), region = 85 }

</bundles_post_ra>
